<compile_context>
chip_gen: v6e
topology: v6e:2x2x1
jax: 0.10.0
libtpu: 0.0.40
codegen_flags: <defaults>
</compile_context>

<pallas_src>
import functools

import jax
import jax.numpy as jnp
from jax import lax
from jax.experimental import pallas as pl
from jax.experimental.pallas import tpu as pltpu


_COS_EPS = 1e-8                    # torch.nn.CosineSimilarity default eps
_LANES = 128
_SUBLANES = 8
# ~2 MiB of useful HBM bytes per input block per grid step (4 MiB combined):
# amortizes the ~0.35 us fixed per-step cost on v5e / v6e / v7x.
_TARGET_BLOCK_BYTES = 2 * 1024 * 1024
# 2 inputs x 2 pipeline buffers + accumulator must fit v5e's 16 MiB default
# scoped VMEM with headroom (v6e / v7x have >= 32 MiB scoped).
_VMEM_BUDGET_BYTES = 10 * 1024 * 1024


def _round_up(x, m):
    return ((x + m - 1) // m) * m


def _nt_xent_pos_kernel(zi_ref, zj_ref, out_ref, acc_ref, *,
                        n_rows, block_rows, n_seg, seg_len, inv_temp,
                        needs_mask):
    """Accumulate sum_r (cos(z_i[r], z_j[r]) / T)^2 ; per-core partial in out_ref."""
    b = pl.program_id(1)

    @pl.when(b == 0)
    def _init():
        acc_ref[...] = jnp.zeros_like(acc_ref)

    zi = zi_ref[...].astype(jnp.float32)                       # [TB, CB]
    zj = zj_ref[...].astype(jnp.float32)
    pij = zi * zj
    pii = zi * zi
    pjj = zj * zj

    if n_seg == 1:
        # One original sample per kernel row: plain lane reduction.
        dot = jnp.sum(pij, axis=-1, keepdims=True)             # [TB, 1]
        ni2 = jnp.sum(pii, axis=-1, keepdims=True)
        nj2 = jnp.sum(pjj, axis=-1, keepdims=True)
    else:
        # Lane-dense fold: each kernel row packs n_seg original rows of length
        # seg_len.  Segment sums via a tiny block-diagonal 0/1 matmul on the
        # otherwise-idle MXU (avoids lane-sparse XLU reductions).
        cb = n_seg * seg_len
        r_idx = lax.broadcasted_iota(jnp.int32, (cb, n_seg), 0)
        c_idx = lax.broadcasted_iota(jnp.int32, (cb, n_seg), 1)
        seg = (r_idx // seg_len == c_idx).astype(jnp.float32)  # [CB, n_seg]
        dot = jnp.dot(pij, seg, preferred_element_type=jnp.float32)  # [TB, n_seg]
        ni2 = jnp.dot(pii, seg, preferred_element_type=jnp.float32)
        nj2 = jnp.dot(pjj, seg, preferred_element_type=jnp.float32)

    # cos = dot / max(||zi||*||zj||, eps); rsqrt keeps the divide on the EUP.
    inv_norm = lax.rsqrt(jnp.maximum(ni2 * nj2, _COS_EPS * _COS_EPS))
    pos = dot * inv_norm * inv_temp
    pos2 = pos * pos

    if needs_mask:
        # Only emitted (statically) when some grid step can see rows >= n_rows:
        # a padded tail block and/or the clamped phantom block of an odd block
        # count.  Mask is applied AFTER the arithmetic with jnp.where so any
        # NaN/Inf from padded garbage rows is discarded.
        blk = pl.program_id(0) * pl.num_programs(1) + b
        row = lax.broadcasted_iota(jnp.int32, pos2.shape, 0) + blk * block_rows
        pos2 = jnp.where(row < n_rows, pos2, 0.0)

    acc_ref[...] += pos2                                       # VPU-only accumulate

    @pl.when(b == pl.num_programs(1) - 1)
    def _finalize():
        # Single reduction + single output store per core; scale is applied in
        # the wrapper.
        out_ref[...] = jnp.sum(acc_ref[...]).reshape(1, 1, 1)


def nt_xent_pos_loss(z_i, z_j, *, temperature,
                     target_block_bytes=_TARGET_BLOCK_BYTES):
    B, C = z_i.shape
    assert z_j.shape == (B, C)
    N = 2 * B
    itemsize = jnp.dtype(z_i.dtype).itemsize

    # Lane-dense fold for narrow representations (C < 128): pack k = 128 // C
    # consecutive rows into one 128-lane row (pure metadata reshape, no copy).
    n_seg = 1
    if C < _LANES and _LANES % C == 0:
        k = _LANES // C
        if k > 1 and B % k == 0:
            n_seg = k
    if n_seg > 1:
        zi2 = z_i.reshape(B // n_seg, n_seg * C)
        zj2 = z_j.reshape(B // n_seg, n_seg * C)
    else:
        zi2, zj2 = z_i, z_j
    R, CB = zi2.shape

    # Block rows sized by bytes (HBM-bound kernel): target useful bytes per
    # input per step, capped by the scoped-VMEM budget (lane padding included).
    lane_cols = max(_round_up(CB, _LANES), _LANES)
    vmem_per_row = 4 * lane_cols * itemsize + _LANES * 4       # 2 in x 2 buf + acc
    vmem_rows = max(_SUBLANES,
                    (_VMEM_BUDGET_BYTES // vmem_per_row) // _SUBLANES * _SUBLANES)
    tgt_rows = max(_SUBLANES,
                   _round_up(max(target_block_bytes // (CB * itemsize), 1),
                             _SUBLANES))
    tb = min(tgt_rows, vmem_rows)
    if tb >= R:
        tb = R          # single block covering all rows: no padding, no mask

    n_blocks = -(-R // tb)
    n_split = 2 if n_blocks >= 2 else 1        # feeds both TensorCores on v7x
    nb = -(-n_blocks // n_split)
    needs_mask = (n_split * nb * tb) != R

    if n_split * nb == n_blocks:
        def row_block(c, b):
            return (c * nb + b, 0)
    else:
        # Odd block count: core 1's final step re-reads the last real block
        # (clamped index); its contribution is zeroed by the row mask above.
        last = n_blocks - 1

        def row_block(c, b):
            return (jnp.minimum(c * nb + b, last), 0)

    kernel = functools.partial(
        _nt_xent_pos_kernel,
        n_rows=R, block_rows=tb, n_seg=n_seg, seg_len=C,
        inv_temp=1.0 / float(temperature), needs_mask=needs_mask)

    partials = pl.pallas_call(
        kernel,
        out_shape=jax.ShapeDtypeStruct((n_split, 1, 1), jnp.float32),
        grid=(n_split, nb),
        in_specs=[pl.BlockSpec((tb, CB), row_block),
                  pl.BlockSpec((tb, CB), row_block)],
        out_specs=pl.BlockSpec((1, 1, 1), lambda c, b: (c, 0, 0)),
        scratch_shapes=[pltpu.VMEM((tb, n_seg), jnp.float32)],
        compiler_params=pltpu.CompilerParams(
            dimension_semantics=("parallel", "arbitrary")),
    )(zi2, zj2)

    # loss = MSELoss(mean)([pos; pos], 0) / N = 2 * sum_r pos_r^2 / N^2
    return jnp.sum(partials) * jnp.float32(2.0 / float(N * N))


class NT_Xent_pos:
    """JAX/Pallas port of the PyTorch NT_Xent_pos module (forward pass only)."""

    def __init__(self, batch_size, temperature):
        self.batch_size = int(batch_size)
        self.temperature = float(temperature)
        # NOTE: the PyTorch module precomputes a negative-pair mask in __init__
        # but never uses it in forward(); nothing to port.

    def __call__(self, z_i, z_j):
        assert z_i.shape == z_j.shape and z_i.shape[0] == self.batch_size
        return nt_xent_pos_loss(z_i, z_j, temperature=self.temperature)

    forward = __call__


def _nt_xent_pos_reference(z_i, z_j, temperature):
    """Pure-JAX transliteration of the PyTorch forward (for verification)."""
    B = z_i.shape[0]
    N = 2 * B
    z = jnp.concatenate([z_i, z_j], axis=0).astype(jnp.float32)
    norm = jnp.linalg.norm(z, axis=-1)
    denom = jnp.maximum(norm[:, None] * norm[None, :], _COS_EPS)
    sim = (z @ z.T) / denom / temperature
    sim_i_j = jnp.diagonal(sim, offset=B)
    sim_j_i = jnp.diagonal(sim, offset=-B)
    pos = jnp.concatenate([sim_i_j, sim_j_i]).reshape(N, 1)
    loss = jnp.mean(pos ** 2)          # MSELoss(reduction='mean') vs zero labels
    return loss / N


if __name__ == "__main__":
    key = jax.random.PRNGKey(0)

    # (batch, channels, dtype, temperature, target_block_bytes override)
    cases = [
        (2,   32,  jnp.float32,  0.5, None),    # tiny module-default case, single block
        (8,   32,  jnp.float32,  0.5, None),    # lane-dense fold path (C < 128)
        (40,  32,  jnp.float32,  0.5, 2048),    # fold + 2-way core split + masked tail
        (100, 128, jnp.float32,  0.2, 16384),   # multi-block per core + masked tail
        (72,  128, jnp.float32,  1.0, 8192),    # odd block count -> clamped phantom block
        (64,  256, jnp.bfloat16, 0.5, None),    # bf16 inputs (half the HBM bytes)
    ]

    for idx, (B, C, dtype, temp, tgt) in enumerate(cases):
        key, k1, k2 = jax.random.split(key, 3)
        z_i = jax.random.normal(k1, (B, C), jnp.float32).astype(dtype)
        z_j = jax.random.normal(k2, (B, C), jnp.float32).astype(dtype)

        kwargs = {} if tgt is None else {"target_block_bytes": tgt}
        loss = nt_xent_pos_loss(z_i, z_j, temperature=temp, **kwargs)
        loss = float(jax.block_until_ready(loss))
        ref = float(jax.block_until_ready(_nt_xent_pos_reference(z_i, z_j, temp)))
        assert jnp.isfinite(loss), (idx, loss)
        assert abs(loss - ref) <= 1e-5 * max(1.0, abs(ref)), (idx, loss, ref)

    # Module-style wrapper (matches the PyTorch constructor / forward signature).
    key, k1, k2 = jax.random.split(key, 3)
    z_i = jax.random.normal(k1, (2, 32), jnp.float32)
    z_j = jax.random.normal(k2, (2, 32), jnp.float32)
    loss_fn = NT_Xent_pos(batch_size=2, temperature=0.5)
    mod_loss = float(jax.block_until_ready(loss_fn(z_i, z_j)))
    mod_ref = float(jax.block_until_ready(_nt_xent_pos_reference(z_i, z_j, 0.5)))
    assert abs(mod_loss - mod_ref) <= 1e-5 * max(1.0, abs(mod_ref)), (mod_loss, mod_ref)

    print("KERNEL_OK")
</pallas_src>

<mosaic_0001>
module attributes {stable_mosaic.version = 11 : i64} {
  func.func @_nt_xent_pos_kernel(%arg0: i32, %arg1: i32, %arg2: memref<2x32xf32, #tpu.memory_space<vmem>>, %arg3: memref<2x32xf32, #tpu.memory_space<vmem>>, %arg4: memref<1x1x1xf32, #tpu.memory_space<vmem>>, %arg5: memref<2x1xf32, #tpu.memory_space<vmem>>) attributes {dimension_semantics = [#tpu.dimension_semantics<parallel>, #tpu.dimension_semantics<arbitrary>], iteration_bounds = array<i64: 1, 1>, scalar_prefetch = 0 : i64, scratch_operands = 1 : i64, tpu.core_type = #tpu.core_type<tc>, window_params = [{transform_indices = @transform_0, window_bounds = array<i64: 2, 32>}, {transform_indices = @transform_1, window_bounds = array<i64: 2, 32>}, {transform_indices = @transform_2, window_bounds = array<i64: 1, 1, 1>}]} {
    %c0_i32 = arith.constant 0 : i32
    %0 = arith.cmpi eq, %arg1, %c0_i32 : i32
    %1 = arith.extui %0 : i1 to i32
    %c0_i32_0 = arith.constant 0 : i32
    %2 = arith.cmpi ne, %1, %c0_i32_0 : i32
    scf.if %2 {
      %cst_14 = arith.constant 0.000000e+00 : f32
      %28 = vector.broadcast %cst_14 : f32 to vector<2x1xf32>
      %c0_15 = arith.constant 0 : index
      %c0_16 = arith.constant 0 : index
      %29 = vector.load %arg5[%c0_15, %c0_16] : memref<2x1xf32, #tpu.memory_space<vmem>>, vector<2x1xf32>
      tpu.vector_store %arg5[%c0_15, %c0_16], %28 {strides = array<i32>} : memref<2x1xf32, #tpu.memory_space<vmem>>, vector<2x1xf32>,
    } else {
    }
    %c0 = arith.constant 0 : index
    %c0_1 = arith.constant 0 : index
    %3 = vector.load %arg2[%c0, %c0_1] : memref<2x32xf32, #tpu.memory_space<vmem>>, vector<2x32xf32>
    %c0_2 = arith.constant 0 : index
    %c0_3 = arith.constant 0 : index
    %4 = vector.load %arg3[%c0_2, %c0_3] : memref<2x32xf32, #tpu.memory_space<vmem>>, vector<2x32xf32>
    %5 = arith.mulf %3, %4 : vector<2x32xf32>
    %6 = arith.mulf %3, %3 : vector<2x32xf32>
    %7 = arith.mulf %4, %4 : vector<2x32xf32>
    %cst = arith.constant dense<0.000000e+00> : vector<2xf32>
    %8 = vector.multi_reduction <add>, %5, %cst [1] : vector<2x32xf32> to vector<2xf32>
    %9 = vector.shape_cast %8 : vector<2xf32> to vector<2x1xf32>
    %cst_4 = arith.constant dense<0.000000e+00> : vector<2xf32>
    %10 = vector.multi_reduction <add>, %6, %cst_4 [1] : vector<2x32xf32> to vector<2xf32>
    %11 = vector.shape_cast %10 : vector<2xf32> to vector<2x1xf32>
    %cst_5 = arith.constant dense<0.000000e+00> : vector<2xf32>
    %12 = vector.multi_reduction <add>, %7, %cst_5 [1] : vector<2x32xf32> to vector<2xf32>
    %13 = vector.shape_cast %12 : vector<2xf32> to vector<2x1xf32>
    %14 = arith.mulf %11, %13 : vector<2x1xf32>
    %cst_6 = arith.constant 1.000000e-16 : f32
    %15 = vector.broadcast %cst_6 : f32 to vector<2x1xf32>
    %16 = arith.maximumf %14, %15 : vector<2x1xf32>
    %17 = math.rsqrt %16 : vector<2x1xf32>
    %18 = arith.mulf %9, %17 : vector<2x1xf32>
    %cst_7 = arith.constant 2.000000e+00 : f32
    %19 = vector.broadcast %cst_7 : f32 to vector<2x1xf32>
    %20 = arith.mulf %18, %19 : vector<2x1xf32>
    %21 = arith.mulf %20, %20 : vector<2x1xf32>
    %c0_8 = arith.constant 0 : index
    %c0_9 = arith.constant 0 : index
    %22 = vector.load %arg5[%c0_8, %c0_9] : memref<2x1xf32, #tpu.memory_space<vmem>>, vector<2x1xf32>
    %23 = arith.addf %22, %21 : vector<2x1xf32>
    %c0_10 = arith.constant 0 : index
    %c0_11 = arith.constant 0 : index
    %24 = vector.load %arg5[%c0_10, %c0_11] : memref<2x1xf32, #tpu.memory_space<vmem>>, vector<2x1xf32>
    tpu.vector_store %arg5[%c0_10, %c0_11], %23 {strides = array<i32>} : memref<2x1xf32, #tpu.memory_space<vmem>>, vector<2x1xf32>,
    %c0_i32_12 = arith.constant 0 : i32
    %25 = arith.cmpi eq, %arg1, %c0_i32_12 : i32
    %26 = arith.extui %25 : i1 to i32
    %c0_i32_13 = arith.constant 0 : i32
    %27 = arith.cmpi ne, %26, %c0_i32_13 : i32
    scf.if %27 {
      %c0_14 = arith.constant 0 : index
      %c0_15 = arith.constant 0 : index
      %28 = vector.load %arg5[%c0_14, %c0_15] : memref<2x1xf32, #tpu.memory_space<vmem>>, vector<2x1xf32>
      %29 = vector.shape_cast %28 : vector<2x1xf32> to vector<1x2x1xf32>
      %cst_16 = arith.constant dense<0.000000e+00> : vector<1xf32>
      %30 = vector.multi_reduction <add>, %29, %cst_16 [1, 2] : vector<1x2x1xf32> to vector<1xf32>
      %31 = vector.shape_cast %30 : vector<1xf32> to vector<1x1x1xf32>
      %32 = vector.extract %31[0, 0, 0] : f32 from vector<1x1x1xf32>
      %33 = vector.broadcast %32 : f32 to vector<1x1x1xf32>
      %c0_17 = arith.constant 0 : index
      %c0_18 = arith.constant 0 : index
      %c0_19 = arith.constant 0 : index
      %34 = vector.load %arg4[%c0_17, %c0_18, %c0_19] : memref<1x1x1xf32, #tpu.memory_space<vmem>>, vector<1x1x1xf32>
      tpu.vector_store %arg4[%c0_17, %c0_18, %c0_19], %33 {strides = array<i32>} : memref<1x1x1xf32, #tpu.memory_space<vmem>>, vector<1x1x1xf32>,
    } else {
    }
    return
  }
  func.func @transform_0(%arg0: i32, %arg1: i32) -> (i32, i32) {
    %c1_i32 = arith.constant 1 : i32
    %0 = arith.muli %arg0, %c1_i32 : i32
    %1 = arith.addi %0, %arg1 : i32
    %c0_i32 = arith.constant 0 : i32
    %c0_i32_0 = arith.constant 0 : i32
    return %1, %c0_i32 : i32, i32
  }
  func.func @transform_1(%arg0: i32, %arg1: i32) -> (i32, i32) {
    %c1_i32 = arith.constant 1 : i32
    %0 = arith.muli %arg0, %c1_i32 : i32
    %1 = arith.addi %0, %arg1 : i32
    %c0_i32 = arith.constant 0 : i32
    %c0_i32_0 = arith.constant 0 : i32
    return %1, %c0_i32 : i32, i32
  }
  func.func @transform_2(%arg0: i32, %arg1: i32) -> (i32, i32, i32) {
    %c0_i32 = arith.constant 0 : i32
    %c0_i32_0 = arith.constant 0 : i32
    %c0_i32_1 = arith.constant 0 : i32
    return %arg0, %c0_i32, %c0_i32_0 : i32, i32, i32
  }
}

</mosaic_0001>

<bundles_post_ra>
// kernel: tpu_custom_call.1
= control target key start
LH: loop header
LB: loop body
LE: loop exit
PB: predicated region body
PF: predicated region fallthrough
CT: control target
= control target key end

     0   :  { %7 = vsyncpa [#allocation4], 0  ;;  %s213_s0 = inlined_call_operand.hbm [shape: f32[2,32], index: 0, kind: input, shape index: {}]   ;;  %s214_s1 = inlined_call_operand.hbm [shape: f32[2,32], index: 1, kind: input, shape index: {}]   ;;  %s215_s2 = inlined_call_operand.hbm [shape: f32[1,1,1], index: 2, kind: output, shape index: {}]  }
   0x1   :  { %8 = vsyncpa [#allocation7], 0 }
   0x2   :  { %9 = vsyncpa [#allocation5], 0  ;;  %s182_s9 = smov [#allocation3]   ;;  %s183_s11 = smov [#allocation6]  }
   0x3   :  { %s19_s10 = sshll.u32 %s182_s9, 4  ;;  %s32_s12 = sshll.u32 %s183_s11, 4  ;;  %s20_s10 = int_to_ptr.vmem [resolvable:$true] %s19_s10  ;;  %s33_s12 = int_to_ptr.vmem [resolvable:$true] %s32_s12 }
   0x4   :  { %s124_s13 = scalar_lea.vmem %s20_s10, 32  ;;  %p129_p1 = scmp.lt.s32.totalorder %s20_s10, %s20_s10 }
   0x5   :  { %p125_p0 = scmp.ne.s32.totalorder %s20_s10, %s124_s13  ;;  %p130_p2 = scmp.lt.s32.totalorder %s124_s13, %s124_s13 }
   0x7   :  { %p131_p3 = por %p130_p2, %p129_p1 }
   0x9   :  { %p132_p4 = pnand %p131_p3, %p125_p0 }
   0xb   :  { %135 = shalt.err (!%p132_p4)
}
   0xc   :  { %22 = dma.hbm_to_vmem [thread:$0]  %s213_s0, 32, %s20_s10, [#allocation4]  }
   0xd   :  { %s144_s16 = scalar_lea.vmem %s33_s12, 32  ;;  %p149_p6 = scmp.lt.s32.totalorder %s33_s12, %s33_s12 }
   0xe   :  { %p145_p5 = scmp.ne.s32.totalorder %s33_s12, %s144_s16  ;;  %p150_p7 = scmp.lt.s32.totalorder %s144_s16, %s144_s16 }
  0x10   :  { %p151_p8 = por %p150_p7, %p149_p6 }
  0x12   :  { %p152_p9 = pnand %p151_p8, %p145_p5 }
  0x14   :  { %155 = shalt.err (!%p152_p9)
}
  0x15   :  { %35 = dma.hbm_to_vmem [thread:$0]  %s214_s1, 32, %s33_s12, [#allocation7]  }
  0x16   :  { %176 = dma.done.wait [#allocation4], 32  }
  0x17   :  { %177 = vsyncadd [#allocation4], 4294967264 }
  0x18   :  { %178 = dma.done.wait [#allocation7], 32  }
  0x19   :  { %179 = vsyncadd [#allocation7], 4294967264  ;;  %v50_v0 = vld [vmem:[#allocation3] sm:$0x3]  ;;  %vm55_vm0 = vcmask 254976   ;;  %vm48_vm1 = vcmask 1024  }
  0x1a   :  { %v51_v1 = vld [vmem:[#allocation6] sm:$0x3]  ;;  %v53_v2 = vmul.f32 %v50_v0, %v50_v0  ;;  %v184_v8 = vmov 0.0   ;;  %s185_s0 = smov [#allocation8]   ;;  %vm90_vm2 = vcmask 0  }
  0x1b   :  { %v54_v3 = vmul.f32 %v51_v1, %v51_v1  ;;  %v52_v4 = vmul.f32 %v51_v1, %v50_v0  ;;  %49 = vst.msk [vmem:[#allocation2] sm:$0x3] %vm48_vm1, %v184_v8  ;;  %s98_s1 = sshll.u32 %s185_s0, 4  ;;  %s99_s1 = int_to_ptr.vmem [resolvable:$true] %s98_s1 }
  0x1c   :  { %v59_v5 = vsel %vm55_vm0, %v53_v2, 0.0  ;;  %s156_s20 = scalar_lea.vmem %s99_s1, 16  ;;  %s160_s21 = scalar_lea.vmem %s99_s1, 32 }
  0x1d   :  { %v56_v6 = vsel %vm55_vm0, %v52_v4, 0.0  ;;  %60 = vadd.xlane.f32.xlu0 %v59_v5  ;;  %v62_v7 = vsel %vm55_vm0, %v54_v3, 0.0  ;;  %p157_p10 = scmp.ne.s32.totalorder %s99_s1, %s156_s20  ;;  %p161_p11 = scmp.lt.s32.totalorder %s99_s1, %s99_s1 }
  0x1e   :  { %57 = vadd.xlane.f32.xlu1 %v56_v6  ;;  %p162_p12 = scmp.lt.s32.totalorder %s160_s21, %s156_s20 }
  0x20   :  { %p163_p13 = por %p162_p12, %p161_p11 }
  0x21   :  { %63 = vadd.xlane.f32.xlu0 %v62_v7 }
  0x22   :  { %v71_v17 = vld [vmem:[#allocation2] sm:$0x3]  ;;  %p164_p0 = pnand %p163_p13, %p157_p10 }
  0xa6   :  { %v61_v9 = vpop.xlane.xlu0 %60 }
  0xa7   :  { %v58_v13 = vpop.xlane.xlu1 %57 }
  0xaa   :  { %v64_v10 = vpop.xlane.xlu0 %63 }
  0xab   :  { %v65_v11 = vmul.f32 %v64_v10, %v61_v9 }
  0xad   :  { %v66_v12 = vmax.f32 %v65_v11, 1e-16 }
  0xaf   :  { %114 = vrsqrt.f32 %v66_v12 }
  0xbc   :  { %v115_v14 = vpop.eup %114 }
  0xbd   :  { %v68_v15 = vmul.f32 %v115_v14, %v58_v13 }
  0xbf   :  { %v69_v16 = vmul.f32 2.0, %v68_v15 }
  0xc1   :  { %v70_v18 = vmul.f32 %v69_v16, %v69_v16 }
  0xc3   :  { %v72_v19 = vadd.f32 %v71_v17, %v70_v18 }
  0xc5   :  { %74 = vst.msk [vmem:[#allocation2] sm:$0x3] %vm48_vm1, %v72_v19 }
  0xcc   :  { %v78_v20 = vld [vmem:[#allocation2] sm:$0x3] }
  0xcd   :  { %v79_v21 = vsel %vm48_vm1, %v78_v20, 0.0 }
  0xce   :  { %80 = vadd.xlane.f32.xlu1 %v79_v21 }
 0x157   :  { %v81_v22 = vpop.xlane.xlu1 %80 }
 0x158   :  { %v82_v23 = vrot.slane %v81_v22, 4 }
 0x15a   :  { %v83_v24 = vadd.f32 %v82_v23, %v81_v22 }
 0x15c   :  { %v84_v25 = vrot.slane %v83_v24, 2 }
 0x15e   :  { %v85_v26 = vadd.f32 %v84_v25, %v83_v24 }
 0x160   :  { %v86_v27 = vrot.slane %v85_v26, 1 }
 0x162   :  { %v87_v28 = vadd.f32 %v86_v27, %v85_v26 }
 0x164   :  { %108 = vpush %v87_v28 }
 0x195   :  { %s109_s19 = spop %108 }
 0x196   :  { %v89_v29 = vstv %s109_s19 }
 0x197   :  { %91 = vst.msk [vmem:[#allocation8] sm:$0x1] %vm90_vm2, %v89_v29 }
 0x198   :  { %167 = shalt.err (!%p164_p0)
}
 0x199   :  { %101 = dma.vmem_to_hbm [thread:$0]  %s99_s1, 16, %s215_s2, [#allocation5]  }
 0x19a   :  { %180 = dma.done.wait [#allocation5], 16  }
 0x19b   :  { %181 = vsyncadd [#allocation5], 4294967280 }
 0x19c   :  { %105 = vsyncpa [#allocation4], 1 }
 0x19d   :  { %106 = vsyncpa [#allocation7], 1 }
 0x19e   :  { %107 = vsyncpa [#allocation5], 1 }

</bundles_post_ra>
